<compile_context>
chip_gen: v7x
topology: tpu7x:2x2x1
jax: 0.10.0
libtpu: 0.0.40
codegen_flags: <defaults>
</compile_context>

<pallas_src>
import jax
import jax.numpy as jnp
from jax.experimental import pallas as pl
from jax.experimental.pallas import tpu as pltpu


def _round_up(n: int, m: int) -> int:
    return ((n + m - 1) // m) * m


def value_kernel(x_ref,
                 w0_ref, b0_ref,
                 w1_ref, b1_ref,
                 w2_ref, b2_ref,
                 v_ref):
    x = x_ref[...]

    # layer 0: relu(x @ W0 + b0)   (bias add fused into the same expression)
    h = jnp.maximum(
        jnp.dot(x, w0_ref[...], preferred_element_type=jnp.float32) + b0_ref[...],
        0.0)

    # layer 1: relu(h @ W1 + b1)
    h = jnp.maximum(
        jnp.dot(h, w1_ref[...], preferred_element_type=jnp.float32) + b1_ref[...],
        0.0)

    # value head: h @ W2 + b2  -> [TB, 1]
    v_ref[...] = (jnp.dot(h, w2_ref[...], preferred_element_type=jnp.float32)
                  + b2_ref[...]).astype(v_ref.dtype)


def value_forward(x, params, *, max_tile=512):
    """x: [B, num_input] f32. params: dict of pre-transposed weights/biases.

    Returns value: [B, 1] f32 (== PyTorch ValueNetwork.forward output)."""
    B, num_input = x.shape
    num_hidden = params["w0"].shape[1]

    # Batch tile: multiple of 8 (sublane), capped so VMEM usage stays tiny on
    # every generation (v5e/v6e 128 MiB, v7x 64 MiB) with double buffering.
    TB = min(max_tile, _round_up(B, 8))
    Bp = _round_up(B, TB)
    if Bp != B:
        x = jnp.pad(x, ((0, Bp - B), (0, 0)))

    grid = (Bp // TB,)

    x_map = lambda i: (i, 0)       # stream batch tiles
    w_map = lambda i: (0, 0)       # weights/biases: same block every step -> resident

    in_specs = [
        pl.BlockSpec((TB, num_input), x_map),
        pl.BlockSpec((num_input, num_hidden), w_map),
        pl.BlockSpec((1, num_hidden), w_map),
        pl.BlockSpec((num_hidden, num_hidden), w_map),
        pl.BlockSpec((1, num_hidden), w_map),
        pl.BlockSpec((num_hidden, 1), w_map),
        pl.BlockSpec((1, 1), w_map),
    ]
    out_specs = pl.BlockSpec((TB, 1), x_map)

    flops = 2 * Bp * (num_input * num_hidden + num_hidden * num_hidden + num_hidden)
    weight_bytes = 4 * (num_input * num_hidden + num_hidden * num_hidden + num_hidden
                        + 2 * num_hidden + 1)
    bytes_accessed = 4 * (Bp * num_input + Bp) + weight_bytes

    value = pl.pallas_call(
        value_kernel,
        out_shape=jax.ShapeDtypeStruct((Bp, 1), jnp.float32),
        grid=grid,
        in_specs=in_specs,
        out_specs=out_specs,
        compiler_params=pltpu.CompilerParams(
            dimension_semantics=("parallel",)),
        cost_estimate=pl.CostEstimate(flops=flops,
                                      transcendentals=0,
                                      bytes_accessed=bytes_accessed),
    )(x,
      params["w0"], params["b0"],
      params["w1"], params["b1"],
      params["w2"], params["b2"])

    return value[:B]


def init_params(key, num_input, num_hidden):
    """Deterministic init mimicking torch.nn.Linear (uniform +-1/sqrt(fan_in)).
    Weights stored pre-transposed as [in, out]; biases as [1, out]."""
    def linear(k, fan_in, fan_out):
        kw, kb = jax.random.split(k)
        bound = 1.0 / jnp.sqrt(fan_in)
        w = jax.random.uniform(kw, (fan_in, fan_out), jnp.float32, -bound, bound)
        b = jax.random.uniform(kb, (1, fan_out), jnp.float32, -bound, bound)
        return w, b

    k0, k1, k2 = jax.random.split(key, 3)
    w0, b0 = linear(k0, num_input, num_hidden)
    w1, b1 = linear(k1, num_hidden, num_hidden)
    w2, b2 = linear(k2, num_hidden, 1)
    return dict(w0=w0, b0=b0, w1=w1, b1=b1, w2=w2, b2=b2)


def reference_forward(x, p):
    h = jnp.maximum(x @ p["w0"] + p["b0"], 0.0)
    h = jnp.maximum(h @ p["w1"] + p["b1"], 0.0)
    return h @ p["w2"] + p["b2"]


if __name__ == "__main__":
    B, num_input, num_hidden = 2, 16, 32

    key = jax.random.PRNGKey(0)
    k_params, k_x = jax.random.split(key)
    params = init_params(k_params, num_input, num_hidden)
    x = jax.random.normal(k_x, (B, num_input), jnp.float32)

    value = value_forward(x, params)
    jax.block_until_ready(value)

    ref_value = reference_forward(x, params)
    assert value.shape == (B, 1), f"bad shape {value.shape}"
    assert jnp.allclose(value, ref_value, atol=1e-5), "value mismatch"

    print("KERNEL_OK")
</pallas_src>

<mosaic_0001>
module attributes {stable_mosaic.version = 11 : i64} {
  func.func @value_kernel(%arg0: i32, %arg1: memref<8x16xf32, #tpu.memory_space<vmem>>, %arg2: memref<16x32xf32, #tpu.memory_space<vmem>>, %arg3: memref<1x32xf32, #tpu.memory_space<vmem>>, %arg4: memref<32x32xf32, #tpu.memory_space<vmem>>, %arg5: memref<1x32xf32, #tpu.memory_space<vmem>>, %arg6: memref<32x1xf32, #tpu.memory_space<vmem>>, %arg7: memref<1x1xf32, #tpu.memory_space<vmem>>, %arg8: memref<8x1xf32, #tpu.memory_space<vmem>>) attributes {dimension_semantics = [#tpu.dimension_semantics<parallel>], iteration_bounds = array<i64: 1>, scalar_prefetch = 0 : i64, scratch_operands = 0 : i64, tpu.core_type = #tpu.core_type<tc>, window_params = [{transform_indices = @transform_0, window_bounds = array<i64: 8, 16>}, {pipeline_mode = #tpu.pipeline_mode<synchronous>, transform_indices = @transform_1, window_bounds = array<i64: 16, 32>}, {pipeline_mode = #tpu.pipeline_mode<synchronous>, transform_indices = @transform_2, window_bounds = array<i64: 1, 32>}, {pipeline_mode = #tpu.pipeline_mode<synchronous>, transform_indices = @transform_3, window_bounds = array<i64: 32, 32>}, {pipeline_mode = #tpu.pipeline_mode<synchronous>, transform_indices = @transform_4, window_bounds = array<i64: 1, 32>}, {pipeline_mode = #tpu.pipeline_mode<synchronous>, transform_indices = @transform_5, window_bounds = array<i64: 32, 1>}, {pipeline_mode = #tpu.pipeline_mode<synchronous>, transform_indices = @transform_6, window_bounds = array<i64: 1, 1>}, {transform_indices = @transform_7, window_bounds = array<i64: 8, 1>}]} {
    %c0 = arith.constant 0 : index
    %c0_0 = arith.constant 0 : index
    %0 = vector.load %arg1[%c0, %c0_0] : memref<8x16xf32, #tpu.memory_space<vmem>>, vector<8x16xf32>
    %c0_1 = arith.constant 0 : index
    %c0_2 = arith.constant 0 : index
    %1 = vector.load %arg2[%c0_1, %c0_2] : memref<16x32xf32, #tpu.memory_space<vmem>>, vector<16x32xf32>
    %cst = arith.constant dense<0.000000e+00> : vector<8x32xf32>
    %2 = tpu.matmul %0, %1, %cst {dimension_numbers = #tpu.dot_dimension_numbers<[1], [0], [0], [1], [0, 0, 1, 1], [], []>} : vector<8x16xf32>, vector<16x32xf32>, vector<8x32xf32> -> vector<8x32xf32>
    %c0_3 = arith.constant 0 : index
    %c0_4 = arith.constant 0 : index
    %3 = vector.load %arg3[%c0_3, %c0_4] : memref<1x32xf32, #tpu.memory_space<vmem>>, vector<1x32xf32>
    %4 = vector.broadcast %3 : vector<1x32xf32> to vector<8x32xf32>
    %5 = arith.addf %2, %4 : vector<8x32xf32>
    %cst_5 = arith.constant 0.000000e+00 : f32
    %6 = vector.broadcast %cst_5 : f32 to vector<8x32xf32>
    %7 = arith.maximumf %5, %6 : vector<8x32xf32>
    %c0_6 = arith.constant 0 : index
    %c0_7 = arith.constant 0 : index
    %8 = vector.load %arg4[%c0_6, %c0_7] : memref<32x32xf32, #tpu.memory_space<vmem>>, vector<32x32xf32>
    %cst_8 = arith.constant dense<0.000000e+00> : vector<8x32xf32>
    %9 = tpu.matmul %7, %8, %cst_8 {dimension_numbers = #tpu.dot_dimension_numbers<[1], [0], [0], [1], [0, 0, 1, 1], [], []>} : vector<8x32xf32>, vector<32x32xf32>, vector<8x32xf32> -> vector<8x32xf32>
    %c0_9 = arith.constant 0 : index
    %c0_10 = arith.constant 0 : index
    %10 = vector.load %arg5[%c0_9, %c0_10] : memref<1x32xf32, #tpu.memory_space<vmem>>, vector<1x32xf32>
    %11 = vector.broadcast %10 : vector<1x32xf32> to vector<8x32xf32>
    %12 = arith.addf %9, %11 : vector<8x32xf32>
    %cst_11 = arith.constant 0.000000e+00 : f32
    %13 = vector.broadcast %cst_11 : f32 to vector<8x32xf32>
    %14 = arith.maximumf %12, %13 : vector<8x32xf32>
    %c0_12 = arith.constant 0 : index
    %c0_13 = arith.constant 0 : index
    %15 = vector.load %arg6[%c0_12, %c0_13] : memref<32x1xf32, #tpu.memory_space<vmem>>, vector<32x1xf32>
    %cst_14 = arith.constant dense<0.000000e+00> : vector<8x1xf32>
    %16 = tpu.matmul %14, %15, %cst_14 {dimension_numbers = #tpu.dot_dimension_numbers<[1], [0], [0], [1], [0, 0, 1, 1], [], []>} : vector<8x32xf32>, vector<32x1xf32>, vector<8x1xf32> -> vector<8x1xf32>
    %c0_15 = arith.constant 0 : index
    %c0_16 = arith.constant 0 : index
    %17 = vector.load %arg7[%c0_15, %c0_16] : memref<1x1xf32, #tpu.memory_space<vmem>>, vector<1x1xf32>
    %18 = vector.broadcast %17 : vector<1x1xf32> to vector<8x1xf32>
    %19 = arith.addf %16, %18 : vector<8x1xf32>
    %c0_17 = arith.constant 0 : index
    %c0_18 = arith.constant 0 : index
    %20 = vector.load %arg8[%c0_17, %c0_18] : memref<8x1xf32, #tpu.memory_space<vmem>>, vector<8x1xf32>
    tpu.vector_store %arg8[%c0_17, %c0_18], %19 {strides = array<i32>} : memref<8x1xf32, #tpu.memory_space<vmem>>, vector<8x1xf32>,
    return
  }
  func.func @transform_0(%arg0: i32) -> (i32, i32) {
    %c0_i32 = arith.constant 0 : i32
    %c0_i32_0 = arith.constant 0 : i32
    return %arg0, %c0_i32 : i32, i32
  }
  func.func @transform_1(%arg0: i32) -> (i32, i32) {
    %c0_i32 = arith.constant 0 : i32
    %c0_i32_0 = arith.constant 0 : i32
    %c0_i32_1 = arith.constant 0 : i32
    return %c0_i32, %c0_i32_0 : i32, i32
  }
  func.func @transform_2(%arg0: i32) -> (i32, i32) {
    %c0_i32 = arith.constant 0 : i32
    %c0_i32_0 = arith.constant 0 : i32
    %c0_i32_1 = arith.constant 0 : i32
    return %c0_i32, %c0_i32_0 : i32, i32
  }
  func.func @transform_3(%arg0: i32) -> (i32, i32) {
    %c0_i32 = arith.constant 0 : i32
    %c0_i32_0 = arith.constant 0 : i32
    %c0_i32_1 = arith.constant 0 : i32
    return %c0_i32, %c0_i32_0 : i32, i32
  }
  func.func @transform_4(%arg0: i32) -> (i32, i32) {
    %c0_i32 = arith.constant 0 : i32
    %c0_i32_0 = arith.constant 0 : i32
    %c0_i32_1 = arith.constant 0 : i32
    return %c0_i32, %c0_i32_0 : i32, i32
  }
  func.func @transform_5(%arg0: i32) -> (i32, i32) {
    %c0_i32 = arith.constant 0 : i32
    %c0_i32_0 = arith.constant 0 : i32
    %c0_i32_1 = arith.constant 0 : i32
    return %c0_i32, %c0_i32_0 : i32, i32
  }
  func.func @transform_6(%arg0: i32) -> (i32, i32) {
    %c0_i32 = arith.constant 0 : i32
    %c0_i32_0 = arith.constant 0 : i32
    %c0_i32_1 = arith.constant 0 : i32
    return %c0_i32, %c0_i32_0 : i32, i32
  }
  func.func @transform_7(%arg0: i32) -> (i32, i32) {
    %c0_i32 = arith.constant 0 : i32
    %c0_i32_0 = arith.constant 0 : i32
    return %arg0, %c0_i32 : i32, i32
  }
}

</mosaic_0001>

<bundles_post_ra>
// kernel: tpu_custom_call.1
= control target key start
LH: loop header
LB: loop body
LE: loop exit
PB: predicated region body
PF: predicated region fallthrough
CT: control target
= control target key end

     0   :  { %s542_s0 = inlined_call_operand.hbm [shape: f32[8,16], index: 0, kind: input, shape index: {}]   ;;  %s543_s1 = inlined_call_operand.vmem [shape: f32[16,32], index: 1, kind: input, shape index: {}]   ;;  %s544_s2 = inlined_call_operand.hbm [shape: f32[1,32], index: 2, kind: input, shape index: {}]   ;;  %s545_s3 = inlined_call_operand.vmem [shape: f32[32,32], index: 3, kind: input, shape index: {}]   ;;  %s546_s4 = inlined_call_operand.vmem [shape: f32[1,32], index: 4, kind: input, shape index: {}]   ;;  %s547_s5 = inlined_call_operand.vmem [shape: f32[32,1], index: 5, kind: input, shape index: {}]   ;;  %s548_s6 = inlined_call_operand.<no memory space> [shape: f32[1,1], index: 6, kind: input, shape index: {}]   ;;  %s549_s7 = inlined_call_operand.vmem [shape: f32[8,1], index: 7, kind: output, shape index: {}]  }
   0x1   :  { %v12_v0 = vstv %s548_s6 }
   0x2   :  { %13 = vst [vmem:[#allocation2] sm:$0x1] %v12_v0 }
   0x3   :  { %14 = vsyncpa [#allocation4], 0 }
   0x4   :  { %15 = vsyncpa [#allocation6], 0  ;;  %s431_s26 = smov [#allocation3]   ;;  %s432_s28 = smov [#allocation5]  }
   0x5   :  { %s22_s27 = sshll.u32 %s431_s26, 4  ;;  %s34_s29 = sshll.u32 %s432_s28, 4  ;;  %s23_s27 = int_to_ptr.vmem [resolvable:$true] %s22_s27  ;;  %s35_s29 = int_to_ptr.vmem [resolvable:$true] %s34_s29 }
   0x6   :  { %s383_s9 = scalar_lea.hbm %s542_s0, 128 }
   0x7   :  { %p384_p0 = scmp.ne.s32.totalorder %s542_s0, %s383_s9  ;;  %p387_p1 = scmp.lt.u32.totalorder %s383_s9, %s542_s0 }
   0x9   :  { %p389_p2 = pnand %p387_p1, %p384_p0 }
   0xb   :  { %392 = shalt.err (!%p389_p2)
}
   0xc   :  { %s393_s6 = scalar_lea.vmem %s23_s27, 128  ;;  %p398_p4 = scmp.lt.s32.totalorder %s23_s27, %s23_s27 }
   0xd   :  { %p394_p3 = scmp.ne.s32.totalorder %s23_s27, %s393_s6  ;;  %p399_p5 = scmp.lt.s32.totalorder %s393_s6, %s393_s6 }
   0xf   :  { %p400_p6 = por %p399_p5, %p398_p4 }
  0x11   :  { %p401_p7 = pnand %p400_p6, %p394_p3 }
  0x13   :  { %404 = shalt.err (!%p401_p7)
}
  0x14   :  { %25 = dma.hbm_to_vmem [thread:$0]  %s542_s0, 128, %s23_s27, [#allocation4]  }
  0x15   :  { %s405_s18 = scalar_lea.hbm %s544_s2, 16 }
  0x16   :  { %p406_p8 = scmp.ne.s32.totalorder %s544_s2, %s405_s18  ;;  %p409_p9 = scmp.lt.u32.totalorder %s405_s18, %s544_s2 }
  0x18   :  { %p411_p10 = pnand %p409_p9, %p406_p8 }
  0x1a   :  { %414 = shalt.err (!%p411_p10)
}
  0x1b   :  { %s415_s23 = scalar_lea.vmem %s35_s29, 16  ;;  %s419_s24 = scalar_lea.vmem %s35_s29, 32 }
  0x1c   :  { %p416_p11 = scmp.ne.s32.totalorder %s35_s29, %s415_s23  ;;  %p420_p12 = scmp.lt.s32.totalorder %s35_s29, %s35_s29 }
  0x1d   :  { %p421_p13 = scmp.lt.s32.totalorder %s419_s24, %s415_s23 }
  0x1f   :  { %p422_p0 = por %p421_p13, %p420_p12 }
  0x21   :  { %p423_p1 = pnand %p422_p0, %p416_p11 }
  0x23   :  { %426 = shalt.err (!%p423_p1)
}
  0x24   :  { %37 = dma.hbm_to_vmem [thread:$0]  %s544_s2, 16, %s35_s29, [#allocation6]  }
  0x25   :  { %427 = dma.done.wait [#allocation4], 128  }
  0x26   :  { %428 = vsyncadd [#allocation4], 4294967168 }
  0x27   :  { %429 = dma.done.wait [#allocation6], 16  }
  0x28   :  { %430 = vsyncadd [#allocation6], 4294967280  ;;  %v433_v1 = vmov 0.0|0.0   ;;  %vm434_vm0 = vmmov 0   ;;  %v435_v2 = vmov 0.0   ;;  %v53_v3 = vld [vmem:[%s543_s1] sm:$0xff] }
  0x29   :  { %363 = vmatprep.subr.bf16.mxu0 %v433_v1  ;;  %338 = vmatprep.mubr.msk.f32.mxu0 %vm434_vm0, %v435_v2  ;;  %v54_v4 = vld [vmem:[%s543_s1 + $0x8] sm:$0xff]  ;;  %v137_v6 = vld [vmem:[%s545_s3] sm:$0xff]  ;;  %vm62_vm1 = vcmask 130048   ;;  %v139_v10 = vld [vmem:[%s545_s3 + $0x10] sm:$0xff]  ;;  %vm148_vm2 = vcmask 261120   ;;  %vm307_vm3 = vcmask 7168  }
  0x2a   :  { %366 = vmatprep.subr.bf16.mxu1 %v433_v1  ;;  %349 = vmatprep.mubr.msk.f32.mxu1 %vm434_vm0, %v435_v2  ;;  %v364_v5 = vpack.c.bf16 %v54_v4, %v53_v3  ;;  %v138_v7 = vld [vmem:[%s545_s3 + $0x8] sm:$0xff]  ;;  %v140_v11 = vld [vmem:[%s545_s3 + $0x18] sm:$0xff]  ;;  %v223_v13 = vld [vmem:[%s547_s5] sm:$0xff] }
  0x2b   :  { %v367_v8 = vpack.c.bf16 %v138_v7, %v137_v6  ;;  %v52_v9 = vld [vmem:[#allocation3] sm:$0xff]  ;;  %v370_v12 = vpack.c.bf16 %v140_v11, %v139_v10  ;;  %v315_v16 = vld [vmem:[#allocation5] ss:$0 sm:$0xff]  ;;  %v225_v21 = vld [vmem:[%s547_s5 + $0x10] sm:$0xff] }
  0x2c   :  { %365 = vmatpush3.bf16.msra.mxu0 %v364_v5  ;;  %v224_v14 = vld [vmem:[%s547_s5 + $0x8] sm:$0xff]  ;;  %v226_v22 = vld [vmem:[%s547_s5 + $0x18] sm:$0xff]  ;;  %v317_v24 = vld [vmem:[%s546_s4] ss:$0 sm:$0xff] }
  0x2d   :  { %368 = vmatpush3.bf16.msra.mxu1 %v367_v8  ;;  %372 = vmatprep.subr.bf16.mxu0 %v433_v1  ;;  %v373_v15 = vpack.c.bf16 %v224_v14, %v223_v13  ;;  %v376_v23 = vpack.c.bf16 %v226_v22, %v225_v21  ;;  %v319_v29 = vld [vmem:[#allocation2] ss:$0 sm:$0xff] }
  0x2e   :  { %369 = vmatprep.subr.bf16.mxu1 %v433_v1 }
  0x2f   :  { %339 = vmatmul.mubr.msk.f32.vlgmr.msra.gmra.mrb[0].mxu0 %vm62_vm1, %v52_v9 }
  0x30   :  { %360 = vmatprep.mubr.msk.f32.mxu0 %vm434_vm0, %v435_v2  ;;  %374 = vmatpush3.bf16.msra.mxu0 %v373_v15 }
  0x31   :  { %371 = vmatpush3.bf16.msra.mxu1 %v370_v12  ;;  %375 = vmatprep.subr.bf16.mxu0 %v433_v1 }
  0x34   :  { %377 = vmatpush3.bf16.msra.mxu0 %v376_v23 }
 0x102   :  { %v132_v17 = vpop.f32.mrb[0].mxu0 }
 0x103   :  { %v133_v18 = vadd.f32 %v315_v16, %v132_v17  ;;  %v340_v19 = vpop.f32.mrb[1].mxu0 }
 0x105   :  { %v136_v20 = vmax.f32 %v133_v18, 0.0 }
 0x107   :  { %350 = vmatmul.mubr.msk.f32.vlgmr.msra.gmra.mrb[0].mxu1 %vm148_vm2, %v136_v20 }
 0x1da   :  { %v218_v25 = vpop.f32.mrb[0].mxu1 }
 0x1db   :  { %v219_v26 = vadd.f32 %v317_v24, %v218_v25  ;;  %v351_v27 = vpop.f32.mrb[1].mxu1 }
 0x1dd   :  { %v222_v28 = vmax.f32 %v219_v26, 0.0 }
 0x1df   :  { %361 = vmatmul.mubr.msk.f32.vlgmr.msra.gmra.mrb[2].mxu0 %vm148_vm2, %v222_v28 }
 0x2b2   :  { %v303_v30 = vpop.f32.mrb[2].mxu0 }
 0x2b3   :  { %v304_v31 = vadd.f32 %v319_v29, %v303_v30  ;;  %v362_v32 = vpop.f32.mrb[3].mxu0 }
 0x2b5   :  { %308 = vst.msk [vmem:[%s549_s7] sm:$0xff] %vm307_vm3, %v304_v31 }
 0x2b6   :  { %313 = vsyncpa [#allocation4], 1 }
 0x2b7   :  { %314 = vsyncpa [#allocation6], 1 }

</bundles_post_ra>
